<compile_context>
chip_gen: v5e
topology: v5e:2x2
jax: 0.10.0
libtpu: 0.0.40
codegen_flags: <defaults>
</compile_context>

<pallas_src>
import math

import jax
import jax.numpy as jnp
from jax.experimental import pallas as pl
from jax.experimental.pallas import tpu as pltpu


# ---------------------------------------------------------------------------
# Tiling helpers
# ---------------------------------------------------------------------------

def _sublane(dtype):
    """Required multiple for a blocked second-to-last dim."""
    return {4: 8, 2: 16, 1: 32}.get(jnp.dtype(dtype).itemsize, 8)


def _round_down_mult(v, m):
    return (v // m) * m


def _vmem_limits():
    """(vmem_limit_bytes, per-step block budget), derived per TPU generation."""
    phys = 64 * 1024 * 1024
    try:
        info = pltpu.get_tpu_info()
        phys = int(getattr(info, "vmem_capacity_bytes", phys)) or phys
    except Exception:
        pass  # CPU / interpret / older API: keep the conservative default
    if phys >= 128 * 1024 * 1024:         # v5e / v6e: 128 MiB physical VMEM
        return 80 * 1024 * 1024, 20 * 1024 * 1024
    # v7x: 64 MiB physical; leave headroom for double-buffering + compiler scratch
    return 36 * 1024 * 1024, 10 * 1024 * 1024


# ---------------------------------------------------------------------------
# Primary path: flat, lane-dense, block-diagonal single matmul per step
# ---------------------------------------------------------------------------

def _make_flat_kernel(has_bias):
    """out(tn, d*m2) = x(tn, d*m1) @ blockdiag(weight) (+ bias); all I/O lane-dense."""

    def kernel(x_ref, w_ref, sel_ref, rowid_ref, colid_ref, *rest):
        if has_bias:
            b_ref, o_ref = rest
        else:
            (o_ref,) = rest
        # Rebuild the (d*m1, d*m2) block-diagonal weight every step: a tiny
        # sel-matmul plus an iota mask.  MXU/VPU have large slack in this
        # HBM-bound kernel, and avoiding cross-step scratch state keeps the
        # n grid axis fully "parallel" (legal megacore sharding on v7x).
        tiled = jnp.dot(w_ref[...], sel_ref[...],
                        preferred_element_type=jnp.float32)         # (d*m1, d*m2)
        mask = rowid_ref[...] == colid_ref[...]                     # (d*m1, d*m2)
        w_bd = jnp.where(mask, tiled, 0.0).astype(x_ref.dtype)
        acc = jnp.dot(x_ref[...], w_bd,
                      preferred_element_type=jnp.float32)           # (tn, d*m2)
        if has_bias:
            acc = acc + b_ref[...].astype(jnp.float32)              # (1, d*m2) bcast
        o_ref[...] = acc.astype(o_ref.dtype)

    return kernel


def _locally_connected_flat(x, weight, bias, block_n, vmem_limit, budget):
    n, d, m1 = x.shape
    m2 = weight.shape[-1]
    dtype = x.dtype
    isz = jnp.dtype(dtype).itemsize
    dm1, dm2 = d * m1, d * m2
    has_bias = bias is not None
    sub = _sublane(dtype)

    # Free row-major views -- no HBM data movement.
    x_flat = x.reshape(n, dm1)
    w_flat = weight.reshape(dm1, m2)
    b_flat = bias.reshape(1, dm2) if has_bias else None

    # Tiny helper operands (a few KB) for the in-kernel block-diagonal build;
    # this keeps the per-call weight HBM traffic at d*m1*m2 instead of
    # materializing the full (d*m1, d*m2) block-diagonal in XLA.
    rowid = (jnp.arange(dm1, dtype=jnp.int32) // m1).reshape(dm1, 1)
    colid = (jnp.arange(dm2, dtype=jnp.int32) // m2).reshape(1, dm2)
    sel = (jnp.arange(dm2, dtype=jnp.int32)[None, :] % m2
           == jnp.arange(m2, dtype=jnp.int32)[:, None]).astype(dtype)   # (m2, d*m2)

    # n-tile sizing: weight/sel/ids/bias + block-diag temporaries are resident;
    # only x / out blocks scale with tn (double-buffered by the pipeline).
    resident = (dm1 * m2 + m2 * dm2 + dm1 + dm2 + (dm2 if has_bias else 0)) * isz
    resident += dm1 * dm2 * (4 + isz)
    per_row = 2 * (dm1 + dm2) * isz + dm2 * 4
    if block_n is not None:
        tn = int(block_n)
        if tn < n and (tn <= 0 or tn % sub != 0):
            raise ValueError(f"block_n must be a positive multiple of {sub} or >= n")
    else:
        avail = max(budget - 2 * resident, per_row * sub)
        tn = max(sub, _round_down_mult(avail // per_row, sub))
    if tn >= n:
        tn = n                      # single full-extent block (always legal)
    grid = (pl.cdiv(n, tn),)        # ragged n handled by Pallas (rows independent)

    in_specs = [
        pl.BlockSpec((tn, dm1), lambda i: (i, 0)),   # x: lane-dense loads
        pl.BlockSpec((dm1, m2), lambda i: (0, 0)),   # weight: resident across steps
        pl.BlockSpec((m2, dm2), lambda i: (0, 0)),   # sel
        pl.BlockSpec((dm1, 1), lambda i: (0, 0)),    # row block ids
        pl.BlockSpec((1, dm2), lambda i: (0, 0)),    # col block ids
    ]
    args = [x_flat, w_flat, sel, rowid, colid]
    if has_bias:
        in_specs.append(pl.BlockSpec((1, dm2), lambda i: (0, 0)))
        args.append(b_flat)

    cost = pl.CostEstimate(
        flops=2 * n * dm1 * dm2,     # includes the structural zeros actually executed
        transcendentals=0,
        bytes_accessed=isz * (n * dm1 + dm1 * m2
                              + (dm2 if has_bias else 0) + n * dm2),
    )

    out_flat = pl.pallas_call(
        _make_flat_kernel(has_bias),
        out_shape=jax.ShapeDtypeStruct((n, dm2), dtype),
        grid_spec=pltpu.PrefetchScalarGridSpec(
            num_scalar_prefetch=0,
            grid=grid,
            in_specs=in_specs,
            out_specs=pl.BlockSpec((tn, dm2), lambda i: (i, 0)),  # lane-dense stores
        ),
        compiler_params=pltpu.CompilerParams(
            dimension_semantics=("parallel",),   # independent n-tiles
            vmem_limit_bytes=vmem_limit,
        ),
        cost_estimate=cost,
    )(*args)
    return out_flat.reshape(n, d, m2)            # free view back to [n, d, m2]


# ---------------------------------------------------------------------------
# Fallback path: blocked batched einsum (large d*m1 / d*m2 only)
# ---------------------------------------------------------------------------

def _make_blocked_kernel(has_bias):
    def kernel(*refs):
        if has_bias:
            x_ref, w_ref, b_ref, o_ref = refs
        else:
            x_ref, w_ref, o_ref = refs
        acc = jnp.einsum("nak,akj->naj", x_ref[...], w_ref[...],
                         preferred_element_type=jnp.float32)
        if has_bias:
            acc = acc + b_ref[...].astype(jnp.float32)[None, :, :]
        o_ref[...] = acc.astype(o_ref.dtype)
    return kernel


def _locally_connected_blocked(x, weight, bias, block_d, block_n, vmem_limit, budget):
    n, d, m1 = x.shape
    m2 = weight.shape[-1]
    dtype = x.dtype
    isz = jnp.dtype(dtype).itemsize
    sub = _sublane(dtype)
    has_bias = bias is not None

    # d-tile: second-to-last dim of the x/bias/out blocks -> multiple of the
    # sublane count, or the full extent d.
    if block_d is not None:
        bd = min(int(block_d), d)
        if bd != d and (bd <= 0 or bd % sub != 0):
            raise ValueError(f"block_d must equal d or be a positive multiple of {sub}")
    else:
        w_unit = max(m1 * m2 * isz, 1)
        if 2 * d * w_unit <= budget // 2:
            bd = d                           # whole weight resident, fewest steps
        else:
            bd = max(sub, _round_down_mult((budget // 4) // (2 * w_unit), sub))
            bd = min(bd, d)
    # n-tile: leading block dim, no alignment constraint.
    if block_n is not None:
        tn = max(1, min(int(block_n), n))
    else:
        resident = 2 * (bd * m1 * m2 + bd * m2) * isz
        per_row = 2 * bd * (m1 + m2) * isz + bd * m2 * 4
        avail = max(budget - resident, per_row)
        tn = max(1, min(n, avail // per_row))

    # n innermost so the weight tile (index independent of the n step) stays
    # resident across n-steps; ragged d / n tails handled by Pallas (no pad).
    grid = (pl.cdiv(d, bd), pl.cdiv(n, tn))

    in_specs = [
        pl.BlockSpec((tn, bd, m1), lambda i, j: (j, i, 0)),
        pl.BlockSpec((bd, m1, m2), lambda i, j: (i, 0, 0)),
    ]
    args = [x, weight]
    if has_bias:
        in_specs.append(pl.BlockSpec((bd, m2), lambda i, j: (i, 0)))
        args.append(bias)

    cost = pl.CostEstimate(
        flops=2 * n * d * m1 * m2,
        transcendentals=0,
        bytes_accessed=isz * (n * d * m1 + d * m1 * m2
                              + (d * m2 if has_bias else 0) + n * d * m2),
    )

    return pl.pallas_call(
        _make_blocked_kernel(has_bias),
        out_shape=jax.ShapeDtypeStruct((n, d, m2), dtype),
        grid_spec=pltpu.PrefetchScalarGridSpec(
            num_scalar_prefetch=0,
            grid=grid,
            in_specs=in_specs,
            out_specs=pl.BlockSpec((tn, bd, m2), lambda i, j: (j, i, 0)),
        ),
        compiler_params=pltpu.CompilerParams(
            dimension_semantics=("parallel", "arbitrary"),
            vmem_limit_bytes=vmem_limit,
        ),
        cost_estimate=cost,
    )(*args)


# ---------------------------------------------------------------------------
# Public wrapper
# ---------------------------------------------------------------------------

def locally_connected(x, weight, bias=None, *, block_d=None, block_n=None):
    """Forward of LocallyConnected.

    x: [n, d, m1], weight: [d, m1, m2], bias: [d, m2] or None -> [n, d, m2].
    """
    n, d, m1 = x.shape
    d_w, m1_w, m2 = weight.shape
    if (d_w, m1_w) != (d, m1):
        raise ValueError("weight shape does not match input")
    weight = weight.astype(x.dtype)
    if bias is not None:
        if bias.shape != (d, m2):
            raise ValueError("bias shape does not match weight")
        bias = bias.astype(x.dtype)

    vmem_limit, budget = _vmem_limits()
    dm1, dm2 = d * m1, d * m2
    isz = jnp.dtype(x.dtype).itemsize

    # Flat block-diagonal path only while its (d*m1, d*m2) VMEM temporaries and
    # structural-zero matmul flops stay comfortably inside the HBM-bound regime.
    use_flat = (dm1 * dm2 <= 512 * 512) and (m2 * dm2 * isz <= (1 << 20))
    if block_d is not None and block_d < d:
        use_flat = False     # explicit d-blocking requested -> blocked path

    if use_flat:
        return _locally_connected_flat(x, weight, bias, block_n, vmem_limit, budget)
    return _locally_connected_blocked(x, weight, bias, block_d, block_n,
                                      vmem_limit, budget)


# ---------------------------------------------------------------------------
# Self-test
# ---------------------------------------------------------------------------

if __name__ == "__main__":
    key = jax.random.PRNGKey(0)
    ks = jax.random.split(key, 9)

    def init(kw, kb, d, m1, m2, with_bias=True):
        # Mirrors reset_parameters(): uniform(-sqrt(1/m1), sqrt(1/m1)).
        bound = math.sqrt(1.0 / m1)
        w = jax.random.uniform(kw, (d, m1, m2), jnp.float32, -bound, bound)
        b = (jax.random.uniform(kb, (d, m2), jnp.float32, -bound, bound)
             if with_bias else None)
        return w, b

    def ref(x, w, b):
        out = jnp.einsum("ndk,dkj->ndj", x, w)
        return out if b is None else out + b[None, :, :]

    # 1) Flat block-diagonal path, multi-step grid with a ragged n tail, bias.
    n, d, m1, m2 = 48, 20, 16, 8
    w, b = init(ks[0], ks[1], d, m1, m2)
    x = jax.random.normal(ks[2], (n, d, m1), jnp.float32)
    out = jax.block_until_ready(locally_connected(x, w, b, block_n=32))
    assert out.shape == (n, d, m2)
    assert jnp.allclose(out, ref(x, w, b), atol=1e-4, rtol=1e-4)

    # 2) Flat path, no bias, m2 = 1 (NOTEARS-style head).
    n, d, m1, m2 = 32, 12, 10, 1
    w, _ = init(ks[3], ks[4], d, m1, m2, with_bias=False)
    x = jax.random.normal(ks[5], (n, d, m1), jnp.float32)
    out = jax.block_until_ready(locally_connected(x, w, None))
    assert out.shape == (n, d, m2)
    assert jnp.allclose(out, ref(x, w, None), atol=1e-4, rtol=1e-4)

    # 3) Blocked fallback (forced via block_d): ragged d tail, 2-D grid, bias.
    n, d, m1, m2 = 16, 20, 16, 8
    w, b = init(ks[6], ks[7], d, m1, m2)
    x = jax.random.normal(ks[8], (n, d, m1), jnp.float32)
    out = jax.block_until_ready(locally_connected(x, w, b, block_d=8, block_n=8))
    assert out.shape == (n, d, m2)
    assert jnp.allclose(out, ref(x, w, b), atol=1e-4, rtol=1e-4)

    print("KERNEL_OK")
</pallas_src>

<mosaic_0001>
module attributes {stable_mosaic.version = 11 : i64} {
  func.func @kernel(%arg0: i32, %arg1: memref<32x320xf32, #tpu.memory_space<vmem>>, %arg2: memref<320x8xf32, #tpu.memory_space<vmem>>, %arg3: memref<8x160xf32, #tpu.memory_space<vmem>>, %arg4: memref<320x1xi32, #tpu.memory_space<vmem>>, %arg5: memref<1x160xi32, #tpu.memory_space<vmem>>, %arg6: memref<1x160xf32, #tpu.memory_space<vmem>>, %arg7: memref<32x160xf32, #tpu.memory_space<vmem>>) attributes {dimension_semantics = [#tpu.dimension_semantics<parallel>], iteration_bounds = array<i64: 2>, scalar_prefetch = 0 : i64, scratch_operands = 0 : i64, tpu.core_type = #tpu.core_type<tc>, window_params = [{transform_indices = @transform_0, window_bounds = array<i64: 32, 320>}, {pipeline_mode = #tpu.pipeline_mode<synchronous>, transform_indices = @transform_1, window_bounds = array<i64: 320, 8>}, {pipeline_mode = #tpu.pipeline_mode<synchronous>, transform_indices = @transform_2, window_bounds = array<i64: 8, 160>}, {pipeline_mode = #tpu.pipeline_mode<synchronous>, transform_indices = @transform_3, window_bounds = array<i64: 320, 1>}, {pipeline_mode = #tpu.pipeline_mode<synchronous>, transform_indices = @transform_4, window_bounds = array<i64: 1, 160>}, {pipeline_mode = #tpu.pipeline_mode<synchronous>, transform_indices = @transform_5, window_bounds = array<i64: 1, 160>}, {transform_indices = @transform_6, window_bounds = array<i64: 32, 160>}]} {
    %c0 = arith.constant 0 : index
    %c0_0 = arith.constant 0 : index
    %0 = vector.load %arg2[%c0, %c0_0] : memref<320x8xf32, #tpu.memory_space<vmem>>, vector<320x8xf32>
    %c0_1 = arith.constant 0 : index
    %c0_2 = arith.constant 0 : index
    %1 = vector.load %arg3[%c0_1, %c0_2] : memref<8x160xf32, #tpu.memory_space<vmem>>, vector<8x160xf32>
    %cst = arith.constant dense<0.000000e+00> : vector<320x160xf32>
    %2 = tpu.matmul %0, %1, %cst {dimension_numbers = #tpu.dot_dimension_numbers<[1], [0], [0], [1], [0, 0, 1, 1], [], []>} : vector<320x8xf32>, vector<8x160xf32>, vector<320x160xf32> -> vector<320x160xf32>
    %c0_3 = arith.constant 0 : index
    %c0_4 = arith.constant 0 : index
    %3 = vector.load %arg4[%c0_3, %c0_4] : memref<320x1xi32, #tpu.memory_space<vmem>>, vector<320x1xi32>
    %c0_5 = arith.constant 0 : index
    %c0_6 = arith.constant 0 : index
    %4 = vector.load %arg5[%c0_5, %c0_6] : memref<1x160xi32, #tpu.memory_space<vmem>>, vector<1x160xi32>
    %5 = vector.broadcast %3 : vector<320x1xi32> to vector<320x160xi32>
    %6 = vector.broadcast %4 : vector<1x160xi32> to vector<320x160xi32>
    %7 = arith.cmpi eq, %5, %6 : vector<320x160xi32>
    %cst_7 = arith.constant 0.000000e+00 : f32
    %8 = vector.broadcast %cst_7 : f32 to vector<320x160xf32>
    %9 = arith.select %7, %2, %8 : vector<320x160xi1>, vector<320x160xf32>
    %c0_8 = arith.constant 0 : index
    %c0_9 = arith.constant 0 : index
    %10 = vector.load %arg1[%c0_8, %c0_9] : memref<32x320xf32, #tpu.memory_space<vmem>>, vector<32x320xf32>
    %cst_10 = arith.constant dense<0.000000e+00> : vector<32x160xf32>
    %11 = tpu.matmul %10, %9, %cst_10 {dimension_numbers = #tpu.dot_dimension_numbers<[1], [0], [0], [1], [0, 0, 1, 1], [], []>} : vector<32x320xf32>, vector<320x160xf32>, vector<32x160xf32> -> vector<32x160xf32>
    %c0_11 = arith.constant 0 : index
    %c0_12 = arith.constant 0 : index
    %12 = vector.load %arg6[%c0_11, %c0_12] : memref<1x160xf32, #tpu.memory_space<vmem>>, vector<1x160xf32>
    %13 = vector.broadcast %12 : vector<1x160xf32> to vector<32x160xf32>
    %14 = arith.addf %11, %13 : vector<32x160xf32>
    %c0_13 = arith.constant 0 : index
    %c0_14 = arith.constant 0 : index
    %15 = vector.load %arg7[%c0_13, %c0_14] : memref<32x160xf32, #tpu.memory_space<vmem>>, vector<32x160xf32>
    tpu.vector_store %arg7[%c0_13, %c0_14], %14 {strides = array<i32>} : memref<32x160xf32, #tpu.memory_space<vmem>>, vector<32x160xf32>,
    return
  }
  func.func @transform_0(%arg0: i32) -> (i32, i32) {
    %c0_i32 = arith.constant 0 : i32
    %c0_i32_0 = arith.constant 0 : i32
    return %arg0, %c0_i32 : i32, i32
  }
  func.func @transform_1(%arg0: i32) -> (i32, i32) {
    %c0_i32 = arith.constant 0 : i32
    %c0_i32_0 = arith.constant 0 : i32
    %c0_i32_1 = arith.constant 0 : i32
    return %c0_i32, %c0_i32_0 : i32, i32
  }
  func.func @transform_2(%arg0: i32) -> (i32, i32) {
    %c0_i32 = arith.constant 0 : i32
    %c0_i32_0 = arith.constant 0 : i32
    %c0_i32_1 = arith.constant 0 : i32
    return %c0_i32, %c0_i32_0 : i32, i32
  }
  func.func @transform_3(%arg0: i32) -> (i32, i32) {
    %c0_i32 = arith.constant 0 : i32
    %c0_i32_0 = arith.constant 0 : i32
    %c0_i32_1 = arith.constant 0 : i32
    return %c0_i32, %c0_i32_0 : i32, i32
  }
  func.func @transform_4(%arg0: i32) -> (i32, i32) {
    %c0_i32 = arith.constant 0 : i32
    %c0_i32_0 = arith.constant 0 : i32
    %c0_i32_1 = arith.constant 0 : i32
    return %c0_i32, %c0_i32_0 : i32, i32
  }
  func.func @transform_5(%arg0: i32) -> (i32, i32) {
    %c0_i32 = arith.constant 0 : i32
    %c0_i32_0 = arith.constant 0 : i32
    %c0_i32_1 = arith.constant 0 : i32
    return %c0_i32, %c0_i32_0 : i32, i32
  }
  func.func @transform_6(%arg0: i32) -> (i32, i32) {
    %c0_i32 = arith.constant 0 : i32
    %c0_i32_0 = arith.constant 0 : i32
    return %arg0, %c0_i32 : i32, i32
  }
}

</mosaic_0001>

<bundles_post_ra>
// kernel: tpu_custom_call.1
= control target key start
LH: loop header
LB: loop body
LE: loop exit
PB: predicated region body
PF: predicated region fallthrough
CT: control target
= control target key end

     0   :  { %11 = vsyncpa [#allocation3], 0  ;;  %s2703_s0 = inlined_call_operand.vmem [shape: f32[48,320], index: 0, kind: input, shape index: {}]   ;;  %s2704_s1 = inlined_call_operand.vmem [shape: f32[320,8], index: 1, kind: input, shape index: {}]   ;;  %s2705_s2 = inlined_call_operand.vmem [shape: f32[8,160], index: 2, kind: input, shape index: {}]   ;;  %s2706_s3 = inlined_call_operand.vmem [shape: s32[320,1], index: 3, kind: input, shape index: {}]   ;;  %s2707_s4 = inlined_call_operand.vmem [shape: s32[1,160], index: 4, kind: input, shape index: {}]   ;;  %s2708_s5 = inlined_call_operand.vmem [shape: f32[1,160], index: 5, kind: input, shape index: {}]   ;;  %s2709_s6 = inlined_call_operand.hbm [shape: f32[48,160], index: 6, kind: output, shape index: {}]  }
   0x1   :  { %13 = vsyncpa [#allocation3 + $0x1], 0  ;;  %s1697_s21 = smov 0   ;;  %s1699_s22 = smov 0  }
   0x2   :  { %s1701_s23 = smov 0   ;;  %s1703_s24 = smov 0  }
   0x3 LB: > { %s1718_s25 = sadd.s32 4294967295, %s1656_s24   ;;  %s1347_s26 = sadd.s32 4294967294, %s1656_s24   ;;  %s1656_s24 = sphi %s1703_s24, %s2757_s24   ;;  %s1652_s23 = sphi %s1701_s23, %s2756_s23   ;;  %s1648_s22 = sphi %s1699_s22, %s2755_s22   ;;  %s1644_s21 = sphi %s1697_s21, %s2754_s21  }
   0x4   : > { %s1722_s27 = sadd.s32 1, %s1656_s24   ;;  %s157_s28 = sadd.s32 1, %s1652_s23 }
   0x5   : > { %s154_s29 = ssub.s32 %s1656_s24, %s1722_s27  ;;  %p167_p0 = scmp.ne.s32.totalorder %s1652_s23, %s1648_s22 }
   0x6   : > { %p155_p1 = scmp.eq.s32.totalorder %s154_s29, 0  ;;  %p168_p2 = scmp.eq.s32.totalorder %s1718_s25, 1 }
   0x7   : > { %p173_p3 = scmp.ne.s32.totalorder %s1648_s22, %s1644_s21  ;;  %p174_p4 = scmp.eq.s32.totalorder %s1347_s26, 1 }
   0x8   : > { %s1733_s30 = scalar_select %p155_p1, %s1652_s23, %s157_s28  }
   0x9   : > { %p1735_p5 = por %p168_p2, %p167_p0  ;;  %p1739_p6 = por %p174_p4, %p173_p3 }
   0xa   : > { %p1350_p7 = scmp.ge.s32.totalorder %s1656_s24, 1  ;;  %p227_p8 = scmp.lt.s32.totalorder %s1656_s24, 3 }
   0xc   : > { %p228_p9 = pnand %p1350_p7, %p227_p8 }
   0xe   : > { %231 = sbr.rel (%p228_p9) target bundleno = 630 (0x276), region = 44 }
  0x13   : > { %v326_v0 = vld [vmem:[%s2705_s2] sm:$0xff]  ;;  %v327_v1 = vld [vmem:[%s2705_s2 + $0x8] sm:$0xff]  ;;  %vm328_vm0 = vcmask 64512   ;;  %v288_v4 = vld [vmem:[%s2704_s1 + $0x10] sm:$0xff]  ;;  %v1658_v6 = vmov 0   ;;  %s2325_s10 = sshll.u32 %s1718_s25, 2 }
  0x14   : > { %v286_v2 = vld [vmem:[%s2704_s1] sm:$0xff]  ;;  %464 = vmatpush.msra.mxu0 %v326_v0  ;;  %601 = vmatpush.msra.mxu1 %v327_v1  ;;  %v287_v3 = vld [vmem:[%s2704_s1 + $0x8] sm:$0xff]  ;;  %v1769_v5 = vld [vmem:[%s2704_s1 + $0xd8] sm:$0xff]  ;;  %p269_p10 = scmp.lt.s32.totalorder %s2325_s10, 5  ;;  %s260_s16 = sand.u32 1, %s1648_s22  }
  0x15   : > { %1354 = vmatmul.msk.f32.vlgmr.msra.gmra.mxu0 %vm328_vm0, %v286_v2  ;;  %1394 = vmatmul.msk.f32.vlgmr.msra.gmra.mxu1 %vm328_vm0, %v286_v2  ;;  %v738_v7 = vld [vmem:[%s2706_s3 + $0x78] sm:$0xff]  ;;  %v1784_v9 = vld [vmem:[%s2704_s1 + $0xe0] sm:$0xff]  ;;  %v737_v10 = vld [vmem:[%s2706_s3 + $0x70] sm:$0xff]  ;;  %s1351_s19 = sshll.u32 %s260_s16, 6  ;;  %s2642_s26 = scalar_lea.sflag [#allocation3], %s260_s16 }
  0x16   : > { %1536 = vmatpush.msra.mxu2 %v326_v0  ;;  %1537 = vmatpush.msra.mxu3 %v327_v1  ;;  %v289_v8 = vld [vmem:[%s2704_s1 + $0x18] sm:$0xff]  ;;  %v290_v11 = vld [vmem:[%s2704_s1 + $0x20] sm:$0xff]  ;;  %v1802_v13 = vld [vmem:[%s2704_s1 + $0xe8] sm:$0xff]  ;;  %s270_s11 = scalar_select %p269_p10, %s2325_s10, 5 }
  0x17   : > { %1381 = vmatmul.msk.f32.vlgmr.msra.gmra.mxu2 %vm328_vm0, %v1769_v5  ;;  %1580 = vset.pattern.permute.xlu0 %v1658_v6  ;;  %v754_v12 = vld [vmem:[%s2706_s3 + $0xf8] sm:$0xff]  ;;  %v752_v14 = vld [vmem:[%s2706_s3 + $0xe8] sm:$0xff]  ;;  %v1820_v17 = vld [vmem:[%s2704_s1 + $0xf0] sm:$0xff]  ;;  %s2626_s20 = scalar_lea.vmem [#allocation2], %s1351_s19  ;;  %s1269_s28 = ssub.s32 (%p1735_p5), 6, %s2325_s10 }
  0x18   : > { %1581 = vset.pattern.permute.xlu1 %v1658_v6  ;;  %810 = vperm.xlu0 %1580, %v738_v7   ;;  %v291_v15 = vld [vmem:[%s2704_s1 + $0x28] sm:$0xff]  ;;  %v733_v18 = vld [vmem:[%s2706_s3 + $0x50] sm:$0xff]  ;;  %v734_v20 = vld [vmem:[%s2706_s3 + $0x58] sm:$0xff]  ;;  %s1538_s12 = smul.u32 24, %s270_s11  ;;  %p1270_p11 = scmp.lt.s32.totalorder (%p1735_p5), %s1269_s28, 4 }
  0x19   : > { %1582 = vset.pattern.permute.xlu2 %v1658_v6  ;;  %858 = vperm.xlu1 %1581, %v754_v12   ;;  %v736_v16 = vld [vmem:[%s2706_s3 + $0x68] sm:$0xff]  ;;  %v292_v19 = vld [vmem:[%s2704_s1 + $0x30] sm:$0xff]  ;;  %v1838_v21 = vld [vmem:[%s2704_s1 + $0xf8] sm:$0xff] }
  0x1a   : > { %v749_v22 = vld [vmem:[%s2706_s3 + $0xd0] sm:$0xff]  ;;  %v293_v23 = vld [vmem:[%s2704_s1 + $0x38] sm:$0xff]  ;;  %v1856_v25 = vld [vmem:[%s2704_s1 + $0x100] sm:$0xff]  ;;  %s2366_s15 = scalar_lea.vmem %s2703_s0, %s1538_s12 }
  0x1b   : > { %v750_v24 = vld [vmem:[%s2706_s3 + $0xd8] sm:$0xff]  ;;  %v753_v26 = vld [vmem:[%s2706_s3 + $0xf0] sm:$0xff]  ;;  %v294_v28 = vld [vmem:[%s2704_s1 + $0x40] sm:$0xff] }
  0x1c   : > { %v730_v27 = vld [vmem:[%s2706_s3 + $0x38] sm:$0xff]  ;;  %855 = vperm.xlu2 %1582, %v753_v26   ;;  %v731_v29 = vld [vmem:[%s2706_s3 + $0x40] sm:$0xff]  ;;  %v1877_v30 = vld [vmem:[%s2704_s1 + $0x108] sm:$0xff] }
  0x1d   : > { %1355 = vmatmul.msk.f32.gmra.mxu0 %vm328_vm0, %v287_v3  ;;  %1395 = vmatmul.msk.f32.gmra.mxu1 %vm328_vm0, %v287_v3  ;;  %v735_v31 = vld [vmem:[%s2706_s3 + $0x60] sm:$0xff]  ;;  %v746_v32 = vld [vmem:[%s2706_s3 + $0xb8] sm:$0xff]  ;;  %v295_v33 = vld [vmem:[%s2704_s1 + $0x48] sm:$0xff] }
  0x1e   : > { %v747_v34 = vld [vmem:[%s2706_s3 + $0xc0] sm:$0xff]  ;;  %v1898_v35 = vld [vmem:[%s2704_s1 + $0x110] sm:$0xff]  ;;  %v728_v39 = vld [vmem:[%s2706_s3 + $0x28] sm:$0xff] }
  0x1f   : > { %1382 = vmatmul.msk.f32.gmra.mxu2 %vm328_vm0, %v1784_v9  ;;  %v751_v36 = vld [vmem:[%s2706_s3 + $0xe0] sm:$0xff]  ;;  %v296_v38 = vld [vmem:[%s2704_s1 + $0x50] sm:$0xff]  ;;  %v1919_v40 = vld [vmem:[%s2704_s1 + $0x118] sm:$0xff] }
  0x20   : > { %807 = vperm.xlu0 %1580, %v737_v10   ;;  %v727_v37 = vld [vmem:[%s2706_s3 + $0x20] sm:$0xff]  ;;  %v732_v41 = vld [vmem:[%s2706_s3 + $0x48] sm:$0xff]  ;;  %v297_v43 = vld [vmem:[%s2704_s1 + $0x58] sm:$0xff] }
  0x21   : > { %804 = vperm.xlu1 %1581, %v736_v16   ;;  %v743_v42 = vld [vmem:[%s2706_s3 + $0xa0] sm:$0xff]  ;;  %v744_v44 = vld [vmem:[%s2706_s3 + $0xa8] sm:$0xff]  ;;  %v1938_v45 = vld [vmem:[%s2704_s1 + $0xd0] sm:$0xff] }
  0x22   : > { %v1945_v46 = vld [vmem:[%s2704_s1 + $0x120] sm:$0xff]  ;;  %1420 = vmatmul.msk.f32.vlgmr.msra.gmra.mxu3 %vm328_vm0, %v1938_v45  ;;  %v748_v47 = vld [vmem:[%s2706_s3 + $0xc8] sm:$0xff]  ;;  %v725_v50 = vld [vmem:[%s2706_s3 + $0x10] sm:$0xff] }
  0x23   : > { %v724_v48 = vld [vmem:[%s2706_s3 + $0x8] sm:$0xff]  ;;  %v298_v49 = vld [vmem:[%s2704_s1 + $0x60] sm:$0xff]  ;;  %v729_v52 = vld [vmem:[%s2706_s3 + $0x30] sm:$0xff] }
  0x24   : > { %801 = vperm.xlu2 %1582, %v735_v31   ;;  %v1968_v51 = vld [vmem:[%s2704_s1 + $0x128] sm:$0xff]  ;;  %v741_v55 = vld [vmem:[%s2706_s3 + $0x90] sm:$0xff]  ;;  %v739_v60 = vld [vmem:[%s2706_s3 + $0x80] sm:$0xff] }
  0x25   : > { %1356 = vmatmul.msk.f32.gmra.mxu0 %vm328_vm0, %v288_v4  ;;  %1396 = vmatmul.msk.f32.gmra.mxu1 %vm328_vm0, %v288_v4  ;;  %v740_v53 = vld [vmem:[%s2706_s3 + $0x88] sm:$0xff]  ;;  %v1991_v56 = vld [vmem:[%s2704_s1 + $0x130] sm:$0xff]  ;;  %v2014_v61 = vld [vmem:[%s2704_s1 + $0x138] sm:$0xff] }
  0x26   : > { %v299_v54 = vld [vmem:[%s2704_s1 + $0x68] sm:$0xff]  ;;  %v745_v57 = vld [vmem:[%s2706_s3 + $0xb0] sm:$0xff]  ;;  %v726_v62 = vld [vmem:[%s2706_s3 + $0x18] sm:$0xff] }
  0x27   : > { %1383 = vmatmul.msk.f32.gmra.mxu2 %vm328_vm0, %v1802_v13  ;;  %v761_v58 = vld [vmem:[%s2706_s3 + $0x130] sm:$0xff]  ;;  %v758_v63 = vld [vmem:[%s2706_s3 + $0x118] sm:$0xff]  ;;  %v760_v1 = vld [vmem:[%s2706_s3 + $0x128] sm:$0xff] }
  0x28   : > { %852 = vperm.xlu0 %1580, %v752_v14   ;;  %v300_v59 = vld [vmem:[%s2704_s1 + $0x70] sm:$0xff]  ;;  %v301_v0 = vld [vmem:[%s2704_s1 + $0x78] sm:$0xff]  ;;  %v755_v3 = vld [vmem:[%s2706_s3 + $0x100] sm:$0xff] }
  0x29   : > { %798 = vperm.xlu1 %1581, %v734_v20   ;;  %v742_v2 = vld [vmem:[%s2706_s3 + $0x98] sm:$0xff]  ;;  %v302_v6 = vld [vmem:[%s2704_s1 + $0x80] sm:$0xff]  ;;  %v757_v7 = vld [vmem:[%s2706_s3 + $0x110] sm:$0xff] }
  0x2a   : > { %1421 = vmatmul.msk.f32.gmra.mxu3 %vm328_vm0, %v1769_v5  ;;  %v762_v12 = vld [vmem:[%s2706_s3 + $0x138] sm:$0xff] }
  0x2c   : > { %849 = vperm.xlu2 %1582, %v751_v36  }
  0x2d   : > { %1357 = vmatmul.msk.f32.gmra.mxu0 %vm328_vm0, %v289_v8  ;;  %1397 = vmatmul.msk.f32.gmra.mxu1 %vm328_vm0, %v289_v8  ;;  %v723_v8 = vld [vmem:[%s2706_s3] sm:$0xff] }
  0x2f   : > { %1384 = vmatmul.msk.f32.gmra.mxu2 %vm328_vm0, %v1820_v17 }
  0x30   : > { %795 = vperm.xlu0 %1580, %v733_v18   ;;  %v759_v18 = vld [vmem:[%s2706_s3 + $0x120] sm:$0xff] }
  0x31   : > { %846 = vperm.xlu1 %1581, %v750_v24  }
  0x32   : > { %1422 = vmatmul.msk.f32.gmra.mxu3 %vm328_vm0, %v1784_v9 }
  0x34   : > { %792 = vperm.xlu2 %1582, %v732_v41  }
  0x35   : > { %1358 = vmatmul.msk.f32.gmra.mxu0 %vm328_vm0, %v290_v11  ;;  %1398 = vmatmul.msk.f32.gmra.mxu1 %vm328_vm0, %v290_v11  ;;  %v303_v11 = vld [vmem:[%s2704_s1 + $0x88] sm:$0xff] }
  0x37   : > { %1385 = vmatmul.msk.f32.gmra.mxu2 %vm328_vm0, %v1838_v21 }
  0x38   : > { %843 = vperm.xlu0 %1580, %v749_v22  }
  0x39   : > { %789 = vperm.xlu1 %1581, %v731_v29  }
  0x3a   : > { %1423 = vmatmul.msk.f32.gmra.mxu3 %vm328_vm0, %v1802_v13 }
  0x3c   : > { %840 = vperm.xlu2 %1582, %v748_v47  }
  0x3d   : > { %1359 = vmatmul.msk.f32.gmra.mxu0 %vm328_vm0, %v291_v15  ;;  %1399 = vmatmul.msk.f32.gmra.mxu1 %vm328_vm0, %v291_v15  ;;  %v304_v15 = vld [vmem:[%s2704_s1 + $0x90] sm:$0xff] }
  0x3f   : > { %1386 = vmatmul.msk.f32.gmra.mxu2 %vm328_vm0, %v1856_v25 }
  0x40   : > { %786 = vperm.xlu0 %1580, %v730_v27  }
  0x41   : > { %837 = vperm.xlu1 %1581, %v747_v34  }
  0x42   : > { %1424 = vmatmul.msk.f32.gmra.mxu3 %vm328_vm0, %v1820_v17 }
  0x44   : > { %783 = vperm.xlu2 %1582, %v729_v52  }
  0x45   : > { %1360 = vmatmul.msk.f32.gmra.mxu0 %vm328_vm0, %v292_v19  ;;  %1400 = vmatmul.msk.f32.gmra.mxu1 %vm328_vm0, %v292_v19 }
  0x47   : > { %1387 = vmatmul.msk.f32.gmra.mxu2 %vm328_vm0, %v1877_v30 }
  0x48   : > { %834 = vperm.xlu0 %1580, %v746_v32  }
  0x49   : > { %780 = vperm.xlu1 %1581, %v728_v39  }
  0x4a   : > { %1425 = vmatmul.msk.f32.gmra.mxu3 %vm328_vm0, %v1838_v21  ;;  %v305_v21 = vld [vmem:[%s2704_s1 + $0x98] sm:$0xff] }
  0x4c   : > { %831 = vperm.xlu2 %1582, %v745_v57  }
  0x4d   : > { %1361 = vmatmul.msk.f32.gmra.mxu0 %vm328_vm0, %v293_v23  ;;  %1401 = vmatmul.msk.f32.gmra.mxu1 %vm328_vm0, %v293_v23 }
  0x4f   : > { %1388 = vmatmul.msk.f32.gmra.mxu2 %vm328_vm0, %v1898_v35 }
  0x50   : > { %777 = vperm.xlu0 %1580, %v727_v37  }
  0x51   : > { %828 = vperm.xlu1 %1581, %v744_v44  }
  0x52   : > { %1426 = vmatmul.msk.f32.gmra.mxu3 %vm328_vm0, %v1856_v25  ;;  %v756_v25 = vld [vmem:[%s2706_s3 + $0x108] sm:$0xff] }
  0x54   : > { %774 = vperm.xlu2 %1582, %v726_v62  }
  0x55   : > { %1362 = vmatmul.msk.f32.gmra.mxu0 %vm328_vm0, %v294_v28  ;;  %1402 = vmatmul.msk.f32.gmra.mxu1 %vm328_vm0, %v294_v28  ;;  %v306_v28 = vld [vmem:[%s2704_s1 + $0xa0] sm:$0xff] }
  0x57   : > { %1389 = vmatmul.msk.f32.gmra.mxu2 %vm328_vm0, %v1919_v40 }
  0x58   : > { %825 = vperm.xlu0 %1580, %v743_v42  }
  0x59   : > { %771 = vperm.xlu1 %1581, %v725_v50  }
  0x5a   : > { %1427 = vmatmul.msk.f32.gmra.mxu3 %vm328_vm0, %v1877_v30 }
  0x5c   : > { %822 = vperm.xlu2 %1582, %v742_v2  }
  0x5d   : > { %1363 = vmatmul.msk.f32.gmra.mxu0 %vm328_vm0, %v295_v33  ;;  %1403 = vmatmul.msk.f32.gmra.mxu1 %vm328_vm0, %v295_v33 }
  0x5f   : > { %1390 = vmatmul.msk.f32.gmra.mxu2 %vm328_vm0, %v1945_v46 }
  0x60   : > { %768 = vperm.xlu0 %1580, %v724_v48  }
  0x61   : > { %819 = vperm.xlu1 %1581, %v741_v55  }
  0x62   : > { %1428 = vmatmul.msk.f32.gmra.mxu3 %vm328_vm0, %v1898_v35  ;;  %v307_v35 = vld [vmem:[%s2704_s1 + $0xa8] sm:$0xff] }
  0x64   : > { %765 = vperm.xlu2 %1582, %v723_v8  }
  0x65   : > { %1364 = vmatmul.msk.f32.gmra.mxu0 %vm328_vm0, %v296_v38  ;;  %1404 = vmatmul.msk.f32.gmra.mxu1 %vm328_vm0, %v296_v38 }
  0x67   : > { %1391 = vmatmul.msk.f32.gmra.mxu2 %vm328_vm0, %v1968_v51 }
  0x68   : > { %816 = vperm.xlu0 %1580, %v740_v53   ;;  %v310_v53 = vld [vmem:[%s2704_s1 + $0xc0] sm:$0xff] }
  0x69   : > { %813 = vperm.xlu1 %1581, %v739_v60   ;;  %v311_v60 = vld [vmem:[%s2704_s1 + $0xc8] sm:$0xff] }
  0x6a   : > { %1429 = vmatmul.msk.f32.gmra.mxu3 %vm328_vm0, %v1919_v40  ;;  %v308_v40 = vld [vmem:[%s2704_s1 + $0xb0] sm:$0xff] }
  0x6c   : > { %882 = vperm.xlu2 %1582, %v762_v12  }
  0x6d   : > { %1365 = vmatmul.msk.f32.gmra.mxu0 %vm328_vm0, %v297_v43  ;;  %1405 = vmatmul.msk.f32.gmra.mxu1 %vm328_vm0, %v297_v43 }
  0x6f   : > { %1392 = vmatmul.msk.f32.gmra.mxu2 %vm328_vm0, %v1991_v56 }
  0x70   : > { %879 = vperm.xlu0 %1580, %v761_v58  }
  0x71   : > { %876 = vperm.xlu1 %1581, %v760_v1  }
  0x72   : > { %1430 = vmatmul.msk.f32.gmra.mxu3 %vm328_vm0, %v1945_v46  ;;  %v309_v46 = vld [vmem:[%s2704_s1 + $0xb8] sm:$0xff] }
  0x74   : > { %873 = vperm.xlu2 %1582, %v759_v18  }
  0x75   : > { %1366 = vmatmul.msk.f32.gmra.mxu0 %vm328_vm0, %v298_v49  ;;  %1406 = vmatmul.msk.f32.gmra.mxu1 %vm328_vm0, %v298_v49 }
  0x76   : > { %v2128_v32 = vpop.permute.xlu2 %855 }
  0x77   : > { %1393 = vmatmul.msk.f32.gmra.mxu2 %vm328_vm0, %v2014_v61 }
  0x78   : > { %870 = vperm.xlu0 %1580, %v758_v63  }
  0x79   : > { %867 = vperm.xlu1 %1581, %v757_v7  }
  0x7a   : > { %1431 = vmatmul.msk.f32.gmra.mxu3 %vm328_vm0, %v1968_v51 }
  0x7c   : > { %864 = vperm.xlu2 %1582, %v756_v25  }
  0x7d   : > { %1367 = vmatmul.msk.f32.gmra.mxu0 %vm328_vm0, %v299_v54  ;;  %1407 = vmatmul.msk.f32.gmra.mxu1 %vm328_vm0, %v299_v54 }
  0x7e   : > { %v2152_v42 = vpop.permute.xlu2 %801 }
  0x80   : > { %861 = vperm.xlu0 %1580, %v755_v3  }
  0x82   : > { %1432 = vmatmul.msk.f32.gmra.mxu3 %vm328_vm0, %v1991_v56 }
  0x85   : > { %1368 = vmatmul.msk.f32.gmra.mxu0 %vm328_vm0, %v300_v59  ;;  %1408 = vmatmul.msk.f32.gmra.mxu1 %vm328_vm0, %v300_v59 }
  0x86   : > { %v2171_v50 = vpop.permute.xlu2 %849 }
  0x8a   : > { %v2080_v16 = vpop.permute.xlu0 %810  ;;  %1433 = vmatmul.msk.f32.gmra.mxu3 %vm328_vm0, %v2014_v61 }
  0x8b   : > { %v2084_v17 = vpop.permute.xlu1 %858 }
  0x8d   : > { %1369 = vmatmul.msk.f32.gmra.mxu0 %vm328_vm0, %v301_v0  ;;  %1409 = vmatmul.msk.f32.gmra.mxu1 %vm328_vm0, %v301_v0 }
  0x8e   : > { %v2190_v57 = vpop.permute.xlu2 %792 }
  0x92   : > { %v2042_v4 = vpop.f32.mrf.mxu0  ;;  %v2044_v5 = vpop.f32.mrf.mxu1 }
  0x93   : > { %2719 = vst [vmem:[#allocation5_spill] sm:$0xff] %v2044_v5  ;;  %v2100_v22 = vpop.permute.xlu0 %807  ;;  %v2102_v23 = vpop.permute.xlu1 %804 }
  0x95   : > { %1370 = vmatmul.msk.f32.gmra.mxu0 %vm328_vm0, %v302_v6  ;;  %1410 = vmatmul.msk.f32.gmra.mxu1 %vm328_vm0, %v302_v6 }
  0x96   : > { %v2207_v0 = vpop.permute.xlu2 %840 }
  0x9a   : > { %v2059_v9 = vpop.f32.mrf.mxu0  ;;  %v2061_v10 = vpop.f32.mrf.mxu1 }
  0x9b   : > { %2720 = vst [vmem:[#allocation6_spill] sm:$0xff] %v2061_v10  ;;  %v2106_v24 = vpop.f32.mrf.mxu2  ;;  %v2122_v29 = vpop.permute.xlu0 %852 }
  0x9c   : > { %v2124_v30 = vpop.permute.xlu1 %798 }
  0x9d   : > { %1371 = vmatmul.msk.f32.gmra.mxu0 %vm328_vm0, %v303_v11  ;;  %1411 = vmatmul.msk.f32.gmra.mxu1 %vm328_vm0, %v303_v11 }
  0x9e   : > { %v2223_v12 = vpop.permute.xlu2 %783 }
  0xa2   : > { %v2073_v13 = vpop.f32.mrf.mxu0  ;;  %v2075_v14 = vpop.f32.mrf.mxu1 }
  0xa3   : > { %2721 = vst [vmem:[#allocation7_spill] sm:$0xff] %v2075_v14  ;;  %v2126_v31 = vpop.f32.mrf.mxu2  ;;  %v2141_v36 = vpop.permute.xlu0 %795 }
  0xa4   : > { %v2143_v37 = vpop.permute.xlu1 %846 }
  0xa5   : > { %1372 = vmatmul.msk.f32.gmra.mxu0 %vm328_vm0, %v304_v15  ;;  %1412 = vmatmul.msk.f32.gmra.mxu1 %vm328_vm0, %v304_v15  ;;  %v2228_v15 = vld [vmem:[%s2707_s4] sm:$0x3] }
  0xaa   : > { %v2091_v19 = vpop.f32.mrf.mxu0  ;;  %v2093_v20 = vpop.f32.mrf.mxu1 }
  0xab   : > { %2722 = vst [vmem:[#allocation8_spill] sm:$0xff] %v2093_v20  ;;  %v553_v41 = vpop.f32.mrf.mxu2  ;;  %v2165_v47 = vpop.permute.xlu0 %843 }
  0xac   : > { %v2167_v48 = vpop.permute.xlu1 %789  ;;  %v2267_v20 = vpop.f32.mrf.mxu3 }
  0xad   : > { %1373 = vmatmul.msk.f32.gmra.mxu0 %vm328_vm0, %v305_v21  ;;  %1413 = vmatmul.msk.f32.gmra.mxu1 %vm328_vm0, %v305_v21 }
  0xb2   : > { %v2111_v26 = vpop.f32.mrf.mxu0  ;;  %v2113_v27 = vpop.f32.mrf.mxu1 }
  0xb3   : > { %2723 = vst [vmem:[#allocation9_spill] sm:$0xff] %v2113_v27  ;;  %v556_v49 = vpop.f32.mrf.mxu2  ;;  %v2184_v54 = vpop.permute.xlu0 %786 }
  0xb4   : > { %v2186_v55 = vpop.permute.xlu1 %837 }
  0xb5   : > { %1374 = vmatmul.msk.f32.gmra.mxu0 %vm328_vm0, %v306_v28  ;;  %1414 = vmatmul.msk.f32.gmra.mxu1 %vm328_vm0, %v306_v28 }
  0xba   : > { %v2130_v33 = vpop.f32.mrf.mxu0  ;;  %v2132_v34 = vpop.f32.mrf.mxu1 }
  0xbb   : > { %2724 = vst [vmem:[#allocation10_spill] sm:$0xff] %v2132_v34  ;;  %v559_v56 = vpop.f32.mrf.mxu2  ;;  %v2201_v62 = vpop.permute.xlu0 %834 }
  0xbc   : > { %v2203_v63 = vpop.permute.xlu1 %780 }
  0xbd   : > { %1375 = vmatmul.msk.f32.gmra.mxu0 %vm328_vm0, %v307_v35  ;;  %1415 = vmatmul.msk.f32.gmra.mxu1 %vm328_vm0, %v307_v35  ;;  %2729 = vst [vmem:[#allocation15_spill] sm:$0xff] %v2203_v63  ;;  %v2238_v35 = vpop.permute.xlu2 %831 }
  0xc2   : > { %v2145_v38 = vpop.f32.mrf.mxu0  ;;  %v2147_v39 = vpop.f32.mrf.mxu1 }
  0xc3   : > { %2725 = vst [vmem:[#allocation11_spill] sm:$0xff] %v2147_v39  ;;  %v2205_v61 = vpop.f32.mrf.mxu2  ;;  %v2215_v3 = vpop.permute.xlu0 %777 }
  0xc4   : > { %v2217_v6 = vpop.permute.xlu1 %828 }
  0xc5   : > { %1376 = vmatmul.msk.f32.gmra.mxu0 %vm328_vm0, %v308_v40  ;;  %1416 = vmatmul.msk.f32.gmra.mxu1 %vm328_vm0, %v308_v40  ;;  %v2241_v40 = vperm.slane %v2228_v15, 0 }
  0xc7   : > { %vm948_vm1 = vcmp.eq.s32.totalorder %v2084_v17, %v2241_v40  ;;  %vm946_vm2 = vcmp.eq.s32.totalorder %v2128_v32, %v2241_v40  ;;  %vm944_vm3 = vcmp.eq.s32.totalorder %v2122_v29, %v2241_v40  ;;  %vm942_vm4 = vcmp.eq.s32.totalorder %v2171_v50, %v2241_v40 }
  0xc8   : > { %1450 = vmatpush.msk.msrb.mxu3 %vm948_vm1, %v559_v56  ;;  %v2259_v56 = vpop.permute.xlu2 %774  ;;  %vm940_vm5 = vcmp.eq.s32.totalorder %v2143_v37, %v2241_v40  ;;  %vm916_vm6 = vcmp.eq.s32.totalorder %v2080_v16, %v2241_v40  ;;  %vm934_vm7 = vcmp.eq.s32.totalorder %v2186_v55, %v2241_v40  ;;  %vm932_vm8 = vcmp.eq.s32.totalorder %v2201_v62, %v2241_v40 }
  0xc9   : > { %2732 = vst [vmem:[#allocation18_spill] sm:$0xff] %v2259_v56  ;;  %vm928_vm9 = vcmp.eq.s32.totalorder %v2217_v6, %v2241_v40  ;;  %vm914_vm14 = vcmp.eq.s32.totalorder %v2100_v22, %v2241_v40  ;;  %vm912_vm15 = vcmp.eq.s32.totalorder %v2102_v23, %v2241_v40  ;;  %vm930_vm1 = vcmp.eq.s32.totalorder %v2238_v35, %v2241_v40 }
  0xca   : > { %v2158_v43 = vpop.f32.mrf.mxu0  ;;  %v2160_v44 = vpop.f32.mrf.mxu1  ;;  %1451 = vmatpush.msk.msrb.mxu3 %vm946_vm2, %v556_v49 }
  0xcb   : > { %2726 = vst [vmem:[#allocation12_spill] sm:$0xff] %v2160_v44  ;;  %v2221_v11 = vpop.f32.mrf.mxu2  ;;  %v2303_v44 = vpop.f32.mrf.mxu3 }
  0xcc   : > { %v2234_v25 = vpop.permute.xlu1 %771  ;;  %1452 = vmatpush.msk.msrb.mxu3 %vm944_vm3, %v553_v41  ;;  %vm910_vm3 = vcmp.eq.s32.totalorder %v2152_v42, %v2241_v40 }
  0xcd   : > { %1377 = vmatmul.msk.f32.gmra.mxu0 %vm328_vm0, %v309_v46  ;;  %1417 = vmatmul.msk.f32.gmra.mxu1 %vm328_vm0, %v309_v46  ;;  %2730 = vst [vmem:[#allocation16_spill] sm:$0xff] %v2234_v25 }
  0xce   : > { %1453 = vmatpush.msk.msrb.mxu3 %vm942_vm4, %v2126_v31  ;;  %vm908_vm4 = vcmp.eq.s32.totalorder %v2124_v30, %v2241_v40 }
  0xd0   : > { %1454 = vmatpush.msk.msrb.mxu3 %vm940_vm5, %v2106_v24  ;;  %v2291_v31 = vpop.permute.xlu2 %822  ;;  %vm906_vm5 = vcmp.eq.s32.totalorder %v2141_v36, %v2241_v40 }
  0xd1   : > { %vm924_vm2 = vcmp.eq.s32.totalorder %v2291_v31, %v2241_v40 }
  0xd2   : > { %v2175_v51 = vpop.f32.mrf.mxu0  ;;  %v2177_v52 = vpop.f32.mrf.mxu1 }
  0xd3   : > { %2727 = vst [vmem:[#allocation13_spill] sm:$0xff] %v2177_v52  ;;  %v2236_v28 = vpop.f32.mrf.mxu2 }
  0xd4   : > { %v2253_v5 = vpop.permute.xlu1 %819 }
  0xd5   : > { %1378 = vmatmul.msk.f32.gmra.mxu0 %vm328_vm0, %v310_v53  ;;  %1418 = vmatmul.msk.f32.gmra.mxu1 %vm328_vm0, %v310_v53  ;;  %vm922_vm11 = vcmp.eq.s32.totalorder %v2253_v5, %v2241_v40 }
  0xda   : > { %v2192_v58 = vpop.f32.mrf.mxu0  ;;  %v2194_v59 = vpop.f32.mrf.mxu1 }
  0xdb   : > { %2728 = vst [vmem:[#allocation14_spill] sm:$0xff] %v2194_v59  ;;  %v2257_v10 = vpop.f32.mrf.mxu2  ;;  %v2317_v59 = vpop.permute.xlu2 %765 }
  0xdc   : > { %v2273_v27 = vpop.permute.xlu1 %813 }
  0xdd   : > { %1379 = vmatmul.msk.f32.gmra.mxu0 %vm328_vm0, %v311_v60  ;;  %1419 = vmatmul.msk.f32.gmra.mxu1 %vm328_vm0, %v311_v60  ;;  %vm918_vm13 = vcmp.eq.s32.totalorder %v2273_v27, %v2241_v40 }
  0xe2   : > { %v2209_v1 = vpop.f32.mrf.mxu0  ;;  %v2211_v2 = vpop.f32.mrf.mxu1 }
  0xe3   : > { %v2289_v24 = vpop.f32.mrf.mxu2 }
  0xe5   : > { %1380 = vmatmul.msk.f32.gmra.mxu0 %vm328_vm0, %v1938_v45  ;;  %v2232_v45 = vpop.permute.xlu0 %825  ;;  %vm936_vm0 = vcmp.eq.s32.totalorder %v2207_v0, %v2241_v40 }
  0xe6   : > { %vm926_vm10 = vcmp.eq.s32.totalorder %v2232_v45, %v2241_v40 }
  0xea   : > { %v499_v7 = vpop.f32.mrf.mxu0  ;;  %v2219_v8 = vpop.f32.mrf.mxu1 }
  0xed   : > { %v2251_v60 = vpop.permute.xlu0 %768 }
  0xee   : > { %2731 = vst [vmem:[#allocation17_spill] sm:$0xff] %v2251_v60 }
  0xf2   : > { %v502_v18 = vpop.f32.mrf.mxu0  ;;  %v2230_v21 = vpop.f32.mrf.mxu1 }
  0xf5   : > { %v2271_v41 = vpop.permute.xlu0 %816 }
  0xf6   : > { %vm920_vm12 = vcmp.eq.s32.totalorder %v2271_v41, %v2241_v40 }
  0xfa   : > { %v505_v46 = vpop.f32.mrf.mxu0  ;;  %v2245_v53 = vpop.f32.mrf.mxu1 }
 0x102   : > { %v508_v49 = vpop.f32.mrf.mxu0  ;;  %v2265_v14 = vpop.f32.mrf.mxu1 }
 0x10a   : > { %v511_v34 = vpop.f32.mrf.mxu0  ;;  %v2293_v39 = vpop.f32.mrf.mxu1 }
 0x10b   : > { %1434 = vmatpush.msk.msrb.mxu2 %vm916_vm6, %v511_v34  ;;  %vm904_vm6 = vcmp.eq.s32.totalorder %v2190_v57, %v2241_v40 }
 0x10d   : > { %1435 = vmatpush.msk.msrb.mxu2 %vm914_vm14, %v508_v49  ;;  %v577_v49 = vpop.f32.mrf.mxu2  ;;  %vm902_vm14 = vcmp.eq.s32.totalorder %v2167_v48, %v2241_v40 }
 0x10f   : > { %1436 = vmatpush.msk.msrb.mxu2 %vm912_vm15, %v505_v46  ;;  %vm900_vm15 = vcmp.eq.s32.totalorder %v2184_v54, %v2241_v40  ;;  %v2344_v46 = vpop.permute.xlu2 %882 }
 0x111   : > { %1437 = vmatpush.msk.msrb.mxu2 %vm910_vm3, %v502_v18  ;;  %v2328_v18 = vpop.f32.mrf.mxu3  ;;  %vm898_vm3 = vcmp.eq.s32.totalorder %v2223_v12, %v2241_v40 }
 0x112   : > { %v2311_v34 = vpop.f32.mrf.mxu0  ;;  %v2313_v52 = vpop.f32.mrf.mxu1 }
 0x113   : > { %1438 = vmatpush.msk.msrb.mxu2 %vm908_vm4, %v499_v7  ;;  %vm896_vm4 = vcmp.eq.s32.totalorder %v2203_v63, %v2241_v40 }
 0x115   : > { %1439 = vmatpush.msk.msrb.mxu2 %vm906_vm5, %v2209_v1  ;;  %vm894_vm5 = vcmp.eq.s32.totalorder %v2215_v3, %v2241_v40 }
 0x117   : > { %1440 = vmatpush.msk.msrb.mxu2 %vm904_vm6, %v2192_v58  ;;  %v580_v58 = vpop.f32.mrf.mxu2  ;;  %vm892_vm6 = vcmp.eq.s32.totalorder %v2259_v56, %v2241_v40 }
 0x119   : > { %1441 = vmatpush.msk.msrb.mxu2 %vm902_vm14, %v2175_v51  ;;  %v2350_v51 = vpop.permute.xlu0 %879  ;;  %vm890_vm14 = vcmp.eq.s32.totalorder %v2234_v25, %v2241_v40 }
 0x11a   : > { %v2334_v7 = vpop.f32.mrf.mxu0  ;;  %v2336_v1 = vpop.f32.mrf.mxu1  ;;  %2733 = vst [vmem:[#allocation19_spill] sm:$0xff] %v2350_v51 }
 0x11b   : > { %1442 = vmatpush.msk.msrb.mxu2 %vm900_vm15, %v2158_v43  ;;  %v690_v43 = vpop.f32.mrf.mxu3  ;;  %vm888_vm15 = vcmp.eq.s32.totalorder %v2251_v60, %v2241_v40 }
 0x11d   : > { %1443 = vmatpush.msk.msrb.mxu2 %vm898_vm3, %v2145_v38  ;;  %vm886_vm3 = vcmp.eq.s32.totalorder %v2317_v59, %v2241_v40 }
 0x11f   : > { %1444 = vmatpush.msk.msrb.mxu2 %vm896_vm4, %v2130_v33  ;;  %vm964_vm4 = vcmp.eq.s32.totalorder %v2344_v46, %v2241_v40  ;;  %v2380_v33 = vld [vmem:[%s2366_s15] sm:$0xff] }
 0x121   : > { %1445 = vmatpush.msk.msrb.mxu2 %vm894_vm5, %v2111_v26  ;;  %v2372_v26 = vpop.permute.xlu1 %876  ;;  %v2383_v25 = vpop.permute.xlu0 %870  ;;  %vm962_vm5 = vcmp.eq.s32.totalorder %v2350_v51, %v2241_v40 }
 0x122   : > { %v2355_v63 = vpop.f32.mrf.mxu0  ;;  %v2357_v38 = vpop.f32.mrf.mxu1  ;;  %2734 = vst [vmem:[#allocation20_spill] sm:$0xff] %v2383_v25 }
 0x123   : > { %1446 = vmatpush.msk.msrb.mxu2 %vm892_vm6, %v2091_v19  ;;  %v2377_v19 = vpop.permute.xlu2 %873  ;;  %vm960_vm6 = vcmp.eq.s32.totalorder %v2372_v26, %v2241_v40 }
 0x125   : > { %1447 = vmatpush.msk.msrb.mxu2 %vm890_vm14, %v2073_v13  ;;  %v583_v13 = vpop.f32.mrf.mxu2  ;;  %vm958_vm14 = vcmp.eq.s32.totalorder %v2377_v19, %v2241_v40 }
 0x127   : > { %1448 = vmatpush.msk.msrb.mxu2 %vm888_vm15, %v2059_v9  ;;  %v693_v9 = vpop.f32.mrf.mxu3  ;;  %vm956_vm15 = vcmp.eq.s32.totalorder %v2383_v25, %v2241_v40 }
 0x129   : > { %1449 = vmatpush.msk.msrb.mxu2 %vm886_vm3, %v2042_v4  ;;  %v2397_v4 = vpop.permute.xlu1 %867 }
 0x12a   : > { %v2385_v60 = vpop.f32.mrf.mxu0  ;;  %v2387_v56 = vpop.f32.mrf.mxu1  ;;  %1093 = vmatmul.f32.vlgmr.msrb.gmra.mxu2 %v2380_v33  ;;  %vm954_vm3 = vcmp.eq.s32.totalorder %v2397_v4, %v2241_v40 }
 0x12b   : > { %1466 = vmatpush.msk.msra.mxu2 %vm964_vm4, %v583_v13  ;;  %v2401_v13 = vpop.permute.xlu2 %864 }
 0x12c   : > { %vm952_vm4 = vcmp.eq.s32.totalorder %v2401_v13, %v2241_v40 }
 0x12d   : > { %1467 = vmatpush.msk.msra.mxu2 %vm962_vm5, %v580_v58 }
 0x12f   : > { %1468 = vmatpush.msk.msra.mxu2 %vm960_vm6, %v577_v49  ;;  %v2409_v49 = vpop.permute.xlu0 %861  ;;  %v696_v25 = vpop.f32.mrf.mxu3 }
 0x130   : > { %vm950_vm5 = vcmp.eq.s32.totalorder %v2409_v49, %v2241_v40 }
 0x131   : > { %1469 = vmatpush.msk.msra.mxu2 %vm958_vm14, %v2289_v24  ;;  %v2414_v24 = vperm.slane %v2228_v15, 1 }
 0x132   : > { %v2403_v51 = vpop.f32.mrf.mxu0  ;;  %v663_v58 = vpop.f32.mrf.mxu1 }
 0x133   : > { %1470 = vmatpush.msk.msra.mxu2 %vm956_vm15, %v2257_v10  ;;  %vm949_vm6 = vcmp.eq.s32.totalorder %v2084_v17, %v2414_v24  ;;  %vm947_vm14 = vcmp.eq.s32.totalorder %v2128_v32, %v2414_v24  ;;  %vm945_vm15 = vcmp.eq.s32.totalorder %v2122_v29, %v2414_v24 }
 0x135   : > { %1471 = vmatpush.msk.msra.mxu2 %vm954_vm3, %v2236_v28  ;;  %vm943_vm3 = vcmp.eq.s32.totalorder %v2171_v50, %v2414_v24 }
 0x137   : > { %1472 = vmatpush.msk.msra.mxu2 %vm952_vm4, %v2221_v11  ;;  %vm941_vm4 = vcmp.eq.s32.totalorder %v2143_v37, %v2414_v24  ;;  %v2440_v11 = vld [vmem:[%s2366_s15 + $0x30] sm:$0xff]  ;;  %v2443_v37 = vpop.f32.mrf.mxu3 }
 0x139   : > { %1473 = vmatpush.msk.msra.mxu2 %vm950_vm5, %v2205_v61  ;;  %vm939_vm5 = vcmp.eq.s32.totalorder %v2165_v47, %v2414_v24  ;;  %v2435_v61 = vld [vmem:[%s2366_s15 + $0x18] sm:$0xff] }
 0x13a   : > { %v529_v10 = vpop.f32.mrf.mxu0  ;;  %v666_v28 = vpop.f32.mrf.mxu1  ;;  %1096 = vmatmul.f32.gmra.mxu2 %v2435_v61 }
 0x13b   : > { %1494 = vmatpush.msk.msrb.mxu2 %vm949_vm6, %v696_v25  ;;  %v2446_v25 = vld [vmem:[%s2366_s15 + $0x48] sm:$0xff]  ;;  %vm937_vm6 = vcmp.eq.s32.totalorder %v2207_v0, %v2414_v24 }
 0x13c   : > { %2735 = vst [vmem:[#allocation21_spill] sm:$0xff] %v2446_v25  ;;  %v1047_v0 = vld [vmem:[%s2366_s15 + $0x8] sm:$0xff] }
 0x13d   : > { %1495 = vmatpush.msk.msrb.mxu2 %vm947_vm14, %v693_v9  ;;  %v2454_v9 = vld [vmem:[%s2366_s15 + $0x10] sm:$0xff]  ;;  %vm1064_vm14 = vcmask 523264  }
 0x13f   : > { %1496 = vmatpush.msk.msrb.mxu2 %vm945_vm15, %v690_v43  ;;  %vm935_vm15 = vcmp.eq.s32.totalorder %v2186_v55, %v2414_v24 }
 0x141   : > { %1497 = vmatpush.msk.msrb.mxu2 %vm943_vm3, %v2328_v18  ;;  %v2449_v18 = vpop.f32.mrf.mxu3  ;;  %vm933_vm3 = vcmp.eq.s32.totalorder %v2201_v62, %v2414_v24  ;;  %v2524_v62 = vld [vmem:[%s2366_s15 + $0x58] sm:$0xff] }
 0x142   : > { %v532_v17 = vpop.f32.mrf.mxu0  ;;  %v669_v32 = vpop.f32.mrf.mxu1  ;;  %1099 = vmatmul.f32.gmra.mxu2 %v2440_v11 }
 0x143   : > { %1498 = vmatpush.msk.msrb.mxu2 %vm941_vm4, %v2303_v44  ;;  %vm931_vm4 = vcmp.eq.s32.totalorder %v2238_v35, %v2414_v24  ;;  %v2752_v35 = vld [vmem:[#allocation21_spill] sm:$0xff] }
 0x145   : > { %1499 = vmatpush.msk.msrb.mxu2 %vm939_vm5, %v2267_v20  ;;  %vm929_vm5 = vcmp.eq.s32.totalorder %v2217_v6, %v2414_v24  ;;  %v2746_v6 = vld [vmem:[#allocation7_spill] sm:$0xff] }
 0x14a   : > { %v535_v29 = vpop.f32.mrf.mxu0  ;;  %v672_v50 = vpop.f32.mrf.mxu1  ;;  %1102 = vmatmul.f32.gmra.mxu2 %v2446_v25 }
 0x152   : > { %v538_v44 = vpop.f32.mrf.mxu0  ;;  %v675_v15 = vpop.f32.mrf.mxu1  ;;  %1474 = vmatmul.msk.f32.vlgmr.msra.gmra.mxu2 %vm1064_vm14, %v2454_v9 }
 0x15a   : > { %v541_v20 = vpop.f32.mrf.mxu0  ;;  %v678_v43 = vpop.f32.mrf.mxu1 }
 0x15b   : > { %1500 = vmatpush.msk.msrb.mxu2 %vm937_vm6, %v678_v43  ;;  %vm938_vm6 = vcmp.eq.s32.totalorder %v2165_v47, %v2241_v40  ;;  %v2468_v43 = vpop.f32.mrf.mxu3  ;;  %v2499_v47 = vld [vmem:[%s2366_s15 + $0x40] sm:$0xff] }
 0x15d   : > { %1501 = vmatpush.msk.msrb.mxu2 %vm935_vm15, %v675_v15  ;;  %v2471_v15 = vld [vmem:[%s2366_s15 + $0x28] sm:$0xff]  ;;  %vm927_vm15 = vcmp.eq.s32.totalorder %v2232_v45, %v2414_v24  ;;  %v2750_v45 = vld [vmem:[#allocation19_spill] sm:$0xff] }
 0x15e   : > { %1475 = vmatmul.msk.f32.gmra.mxu2 %vm1064_vm14, %v2471_v15 }
 0x15f   : > { %1502 = vmatpush.msk.msrb.mxu2 %vm933_vm3, %v672_v50  ;;  %vm925_vm3 = vcmp.eq.s32.totalorder %v2291_v31, %v2414_v24 }
 0x161   : > { %1503 = vmatpush.msk.msrb.mxu2 %vm931_vm4, %v669_v32  ;;  %vm923_vm4 = vcmp.eq.s32.totalorder %v2253_v5, %v2414_v24  ;;  %v1050_v5 = vld [vmem:[%s2366_s15 + $0x20] sm:$0xff] }
 0x162   : > { %v544_v25 = vpop.f32.mrf.mxu0 }
 0x163   : > { %1455 = vmatpush.msk.msrb.mxu3 %vm938_vm6, %v544_v25  ;;  %1504 = vmatpush.msk.msrb.mxu2 %vm929_vm5, %v666_v28  ;;  %v2503_v55 = vpop.f32.mrf.mxu3  ;;  %vm901_vm5 = vcmp.eq.s32.totalorder %v2184_v54, %v2414_v24  ;;  %vm899_vm6 = vcmp.eq.s32.totalorder %v2223_v12, %v2414_v24  ;;  %v1056_v54 = vld [vmem:[%s2366_s15 + $0x50] sm:$0xff]  ;;  %v2748_v12 = vld [vmem:[#allocation6_spill] sm:$0xff] }
 0x165   : > { %1456 = vmatpush.msk.msrb.mxu3 %vm936_vm0, %v541_v20  ;;  %1505 = vmatpush.msk.msrb.mxu2 %vm927_vm15, %v663_v58  ;;  %vm921_vm0 = vcmp.eq.s32.totalorder %v2271_v41, %v2414_v24  ;;  %v1058_v41 = vld [vmem:[%s2708_s5] sm:$0x3] }
 0x166   : > { %1476 = vmatmul.msk.f32.gmra.mxu2 %vm1064_vm14, %v2499_v47  ;;  %v1060_v31 = vperm.slane %v1058_v41, 0  ;;  %v1061_v25 = vperm.slane %v1058_v41, 1 }
 0x167   : > { %1457 = vmatpush.msk.msrb.mxu3 %vm934_vm7, %v538_v44  ;;  %1506 = vmatpush.msk.msrb.mxu2 %vm925_vm3, %v2387_v56  ;;  %vm919_vm7 = vcmp.eq.s32.totalorder %v2273_v27, %v2414_v24  ;;  %v2738_v27 = vld [vmem:[#allocation12_spill] sm:$0xff]  ;;  %vm895_vm3 = vcmp.eq.s32.totalorder %v2215_v3, %v2414_v24 }
 0x169   : > { %1458 = vmatpush.msk.msrb.mxu3 %vm932_vm8, %v535_v29  ;;  %1507 = vmatpush.msk.msrb.mxu2 %vm923_vm4, %v2357_v38  ;;  %vm917_vm8 = vcmp.eq.s32.totalorder %v2080_v16, %v2414_v24 }
 0x16b   : > { %1459 = vmatpush.msk.msrb.mxu3 %vm930_vm1, %v532_v17  ;;  %1508 = vmatpush.msk.msrb.mxu2 %vm921_vm0, %v2336_v1  ;;  %vm905_vm1 = vcmp.eq.s32.totalorder %v2190_v57, %v2414_v24  ;;  %v2743_v57 = vld [vmem:[#allocation18_spill] sm:$0xff] }
 0x16c   : > { %vm893_vm4 = vcmp.eq.s32.totalorder %v2743_v57, %v2414_v24 }
 0x16d   : > { %1460 = vmatpush.msk.msrb.mxu3 %vm928_vm9, %v529_v10  ;;  %1509 = vmatpush.msk.msrb.mxu2 %vm919_vm7, %v2313_v52  ;;  %v711_v52 = vpop.f32.mrf.mxu3  ;;  %vm915_vm9 = vcmp.eq.s32.totalorder %v2100_v22, %v2414_v24  ;;  %v2737_v22 = vld [vmem:[#allocation13_spill] sm:$0xff] }
 0x16e   : > { %1477 = vmatmul.msk.f32.gmra.mxu2 %vm1064_vm14, %v2524_v62 }
 0x16f   : > { %1461 = vmatpush.msk.msrb.mxu3 %vm926_vm10, %v2403_v51  ;;  %vm913_vm10 = vcmp.eq.s32.totalorder %v2102_v23, %v2414_v24  ;;  %v1053_v23 = vld [vmem:[%s2366_s15 + $0x38] sm:$0xff] }
 0x171   : > { %1462 = vmatpush.msk.msrb.mxu3 %vm924_vm2, %v2385_v60  ;;  %vm903_vm2 = vcmp.eq.s32.totalorder %v2167_v48, %v2414_v24  ;;  %v2742_v48 = vld [vmem:[#allocation9_spill] sm:$0xff] }
 0x173   : > { %1463 = vmatpush.msk.msrb.mxu3 %vm922_vm11, %v2355_v63  ;;  %vm911_vm11 = vcmp.eq.s32.totalorder %v2152_v42, %v2414_v24  ;;  %v2741_v42 = vld [vmem:[#allocation10_spill] sm:$0xff]  ;;  %v2744_v63 = vld [vmem:[#allocation8_spill] sm:$0xff] }
 0x175   : > { %1464 = vmatpush.msk.msrb.mxu3 %vm920_vm12, %v2334_v7  ;;  %vm909_vm12 = vcmp.eq.s32.totalorder %v2124_v30, %v2414_v24  ;;  %v714_v16 = vpop.f32.mrf.mxu3  ;;  %v2739_v30 = vld [vmem:[#allocation11_spill] sm:$0xff] }
 0x176   : > { %1209 = vmatmul.f32.vlgmr.msrb.gmra.mxu2 %v1047_v0 }
 0x177   : > { %1465 = vmatpush.msk.msrb.mxu3 %vm918_vm13, %v2311_v34  ;;  %vm907_vm13 = vcmp.eq.s32.totalorder %v2141_v36, %v2414_v24 }
 0x178   : > { %1122 = vmatmul.f32.vlgmr.msrb.gmra.mxu3 %v1047_v0 }
 0x179   : > { %1478 = vmatpush.msk.msra.mxu3 %vm917_vm8, %v2293_v39  ;;  %v2740_v39 = vld [vmem:[#allocation15_spill] sm:$0xff]  ;;  %vm887_vm8 = vcmp.eq.s32.totalorder %v2317_v59, %v2414_v24  ;;  %v2751_v59 = vld [vmem:[#allocation20_spill] sm:$0xff] }
 0x17a   : > { %vm897_vm15 = vcmp.eq.s32.totalorder %v2740_v39, %v2414_v24 }
 0x17b   : > { %1479 = vmatpush.msk.msra.mxu3 %vm915_vm9, %v2265_v14  ;;  %v2736_v14 = vld [vmem:[#allocation14_spill] sm:$0xff]  ;;  %vm965_vm9 = vcmp.eq.s32.totalorder %v2344_v46, %v2414_v24 }
 0x17d   : > { %1480 = vmatpush.msk.msra.mxu3 %vm913_vm10, %v2245_v53  ;;  %v717_v36 = vpop.f32.mrf.mxu3  ;;  %vm963_vm10 = vcmp.eq.s32.totalorder %v2750_v45, %v2414_v24 }
 0x17e   : > { %1212 = vmatmul.f32.gmra.mxu2 %v1050_v5 }
 0x17f   : > { %1481 = vmatpush.msk.msra.mxu3 %vm911_vm11, %v2230_v21  ;;  %v2749_v21 = vld [vmem:[#allocation5_spill] sm:$0xff]  ;;  %vm961_vm11 = vcmp.eq.s32.totalorder %v2372_v26, %v2414_v24 }
 0x180   : > { %1125 = vmatmul.f32.gmra.mxu3 %v1050_v5 }
 0x181   : > { %1482 = vmatpush.msk.msra.mxu3 %vm909_vm12, %v2219_v8  ;;  %v2747_v8 = vld [vmem:[#allocation17_spill] sm:$0xff]  ;;  %vm959_vm12 = vcmp.eq.s32.totalorder %v2377_v19, %v2414_v24 }
 0x182   : > { %vm889_vm7 = vcmp.eq.s32.totalorder %v2747_v8, %v2414_v24 }
 0x183   : > { %1483 = vmatpush.msk.msra.mxu3 %vm907_vm13, %v2211_v2  ;;  %v2745_v2 = vld [vmem:[#allocation16_spill] sm:$0xff]  ;;  %vm957_vm13 = vcmp.eq.s32.totalorder %v2751_v59, %v2414_v24 }
 0x184   : > { %vm891_vm0 = vcmp.eq.s32.totalorder %v2745_v2, %v2414_v24 }
 0x185   : > { %1484 = vmatpush.msk.msra.mxu3 %vm905_vm1, %v2736_v14  ;;  %v720_v3 = vpop.f32.mrf.mxu3  ;;  %vm955_vm1 = vcmp.eq.s32.totalorder %v2397_v4, %v2414_v24 }
 0x186   : > { %1215 = vmatmul.f32.gmra.mxu2 %v1053_v23 }
 0x187   : > { %1485 = vmatpush.msk.msra.mxu3 %vm903_vm2, %v2737_v22  ;;  %vm953_vm2 = vcmp.eq.s32.totalorder %v2401_v13, %v2414_v24 }
 0x188   : > { %1128 = vmatmul.f32.gmra.mxu3 %v1053_v23 }
 0x189   : > { %1486 = vmatpush.msk.msra.mxu3 %vm901_vm5, %v2738_v27  ;;  %vm951_vm5 = vcmp.eq.s32.totalorder %v2409_v49, %v2414_v24 }
 0x18b   : > { %1487 = vmatpush.msk.msra.mxu3 %vm899_vm6, %v2739_v30 }
 0x18d   : > { %1488 = vmatpush.msk.msra.mxu3 %vm897_vm15, %v2741_v42 }
 0x18e   : > { %1218 = vmatmul.f32.gmra.mxu2 %v1056_v54 }
 0x18f   : > { %1489 = vmatpush.msk.msra.mxu3 %vm895_vm3, %v2742_v48 }
 0x190   : > { %1131 = vmatmul.f32.gmra.mxu3 %v1056_v54 }
 0x191   : > { %1490 = vmatpush.msk.msra.mxu3 %vm893_vm4, %v2744_v63 }
 0x193   : > { %1491 = vmatpush.msk.msra.mxu3 %vm891_vm0, %v2746_v6 }
 0x195   : > { %1492 = vmatpush.msk.msra.mxu3 %vm889_vm7, %v2748_v12 }
 0x197   : > { %1493 = vmatpush.msk.msra.mxu3 %vm887_vm8, %v2749_v21 }
 0x198   : > { %1180 = vmatmul.f32.vlgmr.msra.gmra.mxu3 %v2380_v33 }
 0x199   : > { %1510 = vmatpush.msk.msrb.mxu3 %vm965_vm9, %v720_v3 }
 0x19b   : > { %1511 = vmatpush.msk.msrb.mxu3 %vm963_vm10, %v717_v36 }
 0x19d   : > { %1512 = vmatpush.msk.msrb.mxu3 %vm961_vm11, %v714_v16 }
 0x19f   : > { %1513 = vmatpush.msk.msrb.mxu3 %vm959_vm12, %v711_v52 }
 0x1a0   : > { %1183 = vmatmul.f32.gmra.mxu3 %v2435_v61 }
 0x1a1   : > { %1514 = vmatpush.msk.msrb.mxu3 %vm957_vm13, %v2503_v55 }
 0x1a3   : > { %1515 = vmatpush.msk.msrb.mxu3 %vm955_vm1, %v2468_v43 }
 0x1a5   : > { %1516 = vmatpush.msk.msrb.mxu3 %vm953_vm2, %v2449_v18 }
 0x1a7   : > { %1517 = vmatpush.msk.msrb.mxu3 %vm951_vm5, %v2443_v37 }
 0x1a8   : > { %1186 = vmatmul.f32.gmra.mxu3 %v2440_v11 }
 0x1ad   : > { %v1094_v40 = vpop.f32.mrf.mxu2 }
 0x1ae   : > { %v1095_v7 = vadd.f32 %v1094_v40, %v1060_v31 }
 0x1b0   : > { %1189 = vmatmul.f32.gmra.mxu3 %v2752_v35 }
 0x1b8   : > { %1518 = vmatmul.msk.f32.vlgmr.msrb.gmra.mxu3 %vm1064_vm14, %v2454_v9 }
 0x1bd   : > { %v1097_v53 = vpop.f32.mrf.mxu2 }
 0x1be   : > { %v1098_v26 = vadd.f32 %v1097_v53, %v1060_v31 }
 0x1c0   : > { %1519 = vmatmul.msk.f32.gmra.mxu3 %vm1064_vm14, %v2471_v15 }
 0x1c5   : > { %v1100_v60 = vpop.f32.mrf.mxu2 }
 0x1c6   : > { %v1101_v13 = vadd.f32 %v1100_v60, %v1060_v31 }
 0x1c8   : > { %1520 = vmatmul.msk.f32.gmra.mxu3 %vm1064_vm14, %v2499_v47 }
 0x1cd   : > { %v1103_v56 = vpop.f32.mrf.mxu2 }
 0x1ce   : > { %v1104_v28 = vadd.f32 %v1103_v56, %v1060_v31 }
 0x1d0   : > { %1521 = vmatmul.msk.f32.gmra.mxu3 %vm1064_vm14, %v2524_v62  ;;  %vm1252_vm14 = vcmask 261120  }
 0x1d5   : > { %v1152_v34 = vpop.f32.mrf.mxu2 }
 0x1e1   : > { %v1155_v38 = vpop.f32.mrf.mxu2 }
 0x1e9   : > { %v1158_v58 = vpop.f32.mrf.mxu2 }
 0x1f1   : > { %v1161_v32 = vpop.f32.mrf.mxu2 }
 0x1f9   : > { %v1210_v44 = vpop.f32.mrf.mxu2 }
 0x1fb   : > { %v1123_v1 = vpop.f32.mrf.mxu3 }
 0x1fc   : > { %v1124_v46 = vadd.f32 %v1123_v1, %v1095_v7 }
 0x1fe   : > { %v1153_v51 = vadd.f32 %v1152_v34, %v1124_v46 }
 0x200   : > { %1251 = vst [vmem:[%s2626_s20] sm:$0xff] %v1153_v51 }
 0x201   : > { %v1213_v15 = vpop.f32.mrf.mxu2 }
 0x203   : > { %v1126_v19 = vpop.f32.mrf.mxu3 }
 0x204   : > { %v1127_v33 = vadd.f32 %v1126_v19, %v1098_v26 }
 0x206   : > { %v1156_v4 = vadd.f32 %v1155_v38, %v1127_v33 }
 0x208   : > { %1254 = vst [vmem:[%s2626_s20 + $0x10] sm:$0xff] %v1156_v4 }
 0x209   : > { %v1216_v5 = vpop.f32.mrf.mxu2 }
 0x20b   : > { %v1129_v49 = vpop.f32.mrf.mxu3 }
 0x20c   : > { %v1130_v24 = vadd.f32 %v1129_v49, %v1101_v13 }
 0x20e   : > { %v1159_v10 = vadd.f32 %v1158_v58, %v1130_v24 }
 0x210   : > { %1256 = vst [vmem:[%s2626_s20 + $0x20] sm:$0xff] %v1159_v10 }
 0x211   : > { %v1219_v30 = vpop.f32.mrf.mxu2 }
 0x213   : > { %v1132_v17 = vpop.f32.mrf.mxu3 }
 0x214   : > { %v1133_v61 = vadd.f32 %v1132_v17, %v1104_v28 }
 0x216   : > { %v1162_v29 = vadd.f32 %v1161_v32, %v1133_v61 }
 0x218   : > { %1258 = vst [vmem:[%s2626_s20 + $0x30] sm:$0xff] %v1162_v29 }
 0x21b   : > { %v1181_v50 = vpop.f32.mrf.mxu3 }
 0x21c   : > { %v1182_v20 = vadd.f32 %v1181_v50, %v1061_v25 }
 0x21e   : > { %v1211_v9 = vadd.f32 %v1210_v44, %v1182_v20 }
 0x223   : > { %v1184_v11 = vpop.f32.mrf.mxu3 }
 0x224   : > { %v1185_v55 = vadd.f32 %v1184_v11, %v1061_v25 }
 0x226   : > { %v1214_v62 = vadd.f32 %v1213_v15, %v1185_v55 }
 0x22b   : > { %v1187_v37 = vpop.f32.mrf.mxu3 }
 0x22c   : > { %v1188_v16 = vadd.f32 %v1187_v37, %v1061_v25 }
 0x22e   : > { %v1217_v14 = vadd.f32 %v1216_v5, %v1188_v16 }
 0x233   : > { %v1190_v18 = vpop.f32.mrf.mxu3 }
 0x234   : > { %v1191_v27 = vadd.f32 %v1190_v18, %v1061_v25 }
 0x236   : > { %v1220_v36 = vadd.f32 %v1219_v30, %v1191_v27 }
 0x23b   : > { %v1239_v43 = vpop.f32.mrf.mxu3 }
 0x23c   : > { %v1240_v47 = vadd.f32 %v1239_v43, %v1211_v9 }
 0x23e   : > { %1253 = vst.msk [vmem:[%s2626_s20 + $0x8] sm:$0xff] %vm1252_vm14, %v1240_v47 }
 0x243   : > { %v1242_v52 = vpop.f32.mrf.mxu3 }
 0x244   : > { %v1243_v0 = vadd.f32 %v1242_v52, %v1214_v62 }
 0x246   : > { %1255 = vst.msk [vmem:[%s2626_s20 + $0x18] sm:$0xff] %vm1252_vm14, %v1243_v0 }
 0x24b   : > { %v1245_v22 = vpop.f32.mrf.mxu3 }
 0x24c   : > { %v1246_v23 = vadd.f32 %v1245_v22, %v1217_v14 }
 0x24e   : > { %1257 = vst.msk [vmem:[%s2626_s20 + $0x28] sm:$0xff] %vm1252_vm14, %v1246_v23 }
 0x252   : > { %1267 = sbr.rel (!%p1735_p5) target bundleno = 630 (0x276), region = 48 }
 0x253   : > { %v1248_v39 = vpop.f32.mrf.mxu3 }
 0x254   : > { %v1249_v42 = vadd.f32 %v1248_v39, %v1220_v36 }
 0x256   : > { %1259 = vst.msk [vmem:[%s2626_s20 + $0x38] sm:$0xff] %vm1252_vm14, %v1249_v42 }
 0x257   : > { %s2759_s28 = smov (!%p1270_p11, %s1269_s28), 4 }
 0x258   : > { %s1533_s29 = sshll.u32 %s2759_s28, 4 }
 0x259   : > { %s1274_s9 = ssub.s32 64, %s1533_s29 }
 0x25a   : > { %s1275_s11 = sshll.u32 %s1274_s9, 4 }
 0x25b   : > { %1276 = vsyncadd %s2642_s26, %s1275_s11  ;;  %p2651_p12 = scmp.ne.s32.totalorder %s1533_s29, 0  ;;  %s1535_s7 = sshll.u32 %s1718_s25, 6 }
 0x25c   : > { %s1280_s14 = scalar_lea.hbm %s2709_s6, %s1535_s7  ;;  %s1282_s15 = sshll.u32 %s2626_s20, 4  ;;  %s2660_s15 = int_to_ptr.vmem [resolvable:$true] %s1282_s15 }
 0x25d   : > { %s1284_s16 = sshll.u32 %s1280_s14, 4  ;;  %s1530_s17 = sshll.u32 %s2759_s28, 8  ;;  %s2662_s16 = int_to_ptr.hbm [resolvable:$true] %s1284_s16 }
 0x25e   : > { %s1583_s18 = sshra.s32 %s2660_s15, 4  ;;  %s1585_s19 = sshrl.u32 %s1530_s17, 4  ;;  %s1584_s18 = int_to_ptr.vmem [resolvable:$true] %s1583_s18 }
 0x25f   : > { %s1590_s29 = scalar_lea.vmem %s1584_s18, %s1585_s19  ;;  %s1659_s25 = smov [#allocation2]  }
 0x260   : > { %p1591_p13 = scmp.ne.s32.totalorder %s1584_s18, %s1590_s29  ;;  %s1594_s9 = scalar_lea.vmem %s1659_s25, 128 }
 0x261   : > { %p1596_p2 = scmp.lt.s32.totalorder %s1594_s9, %s1590_s29 }
 0x262   : > { %p1592_p0 = pnand %p1591_p13, %p2651_p12 }
 0x264   : > { %p1593_p1 = pneg %p1592_p0 }
 0x266   : > { %p1598_p3 = pnand %p1596_p2, %p1593_p1 }
 0x268   : > { %1601 = shalt.err (!%p1598_p3)
}
 0x269   : > { %s1602_s20 = sshra.s32 %s2662_s16, 4  ;;  %s1613_s10 = scalar_lea.hbm %s2709_s6, 96  ;;  %s1603_s20 = int_to_ptr.hbm [resolvable:$true] %s1602_s20 }
 0x26a   : > { %s1609_s11 = scalar_lea.hbm %s1603_s20, %s1585_s19  ;;  %p1614_p8 = scmp.lt.s32.totalorder %s1603_s20, %s2709_s6 }
 0x26b   : > { %p1610_p4 = scmp.ne.s32.totalorder %s1603_s20, %s1609_s11  ;;  %p1615_p9 = scmp.lt.s32.totalorder %s1613_s10, %s1609_s11 }
 0x26d   : > { %p1611_p5 = pnand %p1610_p4, %p2651_p12  ;;  %p1616_p10 = por %p1615_p9, %p1614_p8 }
 0x26f   : > { %p1612_p7 = pneg %p1611_p5 }
 0x271   : > { %p1617_p11 = pnand %p1616_p10, %p1612_p7 }
 0x273   : > { %1620 = shalt.err (!%p1617_p11)
}
 0x274   : > { %s1660_s29 = smov 256   ;;  %s1661_s19 = smov 16  }
 0x275   : > { %1290 = dma.vmem_to_hbm [thread:$0]  (%p2651_p12), %s2660_s15, %s1530_s17, %s2662_s16, %s2642_s26, %s1660_s29, %s1660_s29, %s1661_s19  }
 0x276 PF: > { %p1544_p13 = scmp.ge.s32.totalorder %s1656_s24, 2  ;;  %s1299_s25 = sand.u32 1, %s1644_s21  }
 0x277   : > { %s1300_s9 = scalar_lea.sflag [#allocation3], %s1299_s25 }
 0x278   : > { %p1541_p0 = pnand %p1544_p13, %p1739_p6 }
 0x27a   : > { %p1542_p1 = pneg %p1541_p0 }
 0x27c   : > { %1639 = dma.done.wait (%p1542_p1), %s1300_s9, 1024  }
 0x27d   : > { %1641 = vsyncadd (%p1542_p1), %s1300_s9, 4294966272  ;;  %p16_p2 = scmp.ge.s32.totalorder %s1722_s27, 4   ;;  %s2754_s21 = smov %s1648_s22 }
 0x27e   : > { %s2755_s22 = smov %s1652_s23  ;;  %s2756_s23 = smov %s1733_s30 }
 0x27f   : > { %s2757_s24 = smov %s1722_s27  ;;  %18 = sbr.rel (!%p16_p2) target bundleno = 3 (0x3), region = 79 }
 0x284   :  { %1306 = vsyncpa [#allocation3], 1 }
 0x285   :  { %1308 = vsyncpa [#allocation3 + $0x1], 1 }

</bundles_post_ra>
